<compile_context>
chip_gen: v6e
topology: v6e:2x2x1
jax: 0.10.0
libtpu: 0.0.40
codegen_flags: <defaults>
</compile_context>

<pallas_src>
import numpy as np
import jax
import jax.numpy as jnp
from jax.experimental import pallas as pl
from jax.experimental.pallas import tpu as pltpu


def _round_up(a: int, b: int) -> int:
    return ((a + b - 1) // b) * b


def unigram_kernel(x_ref, s_ref, a_ref, c_ref, sig_ref):
    """One (V-tile, T-tile) grid step.

    Grid = (nV, nT); axis 0 (V tiles) is 'parallel' (megacore-splittable),
    axis 1 (T tiles) is the reduction axis.  Per V-tile, per-lane token counts
    are accumulated across the T tiles directly into the resident output block
    c_ref; on the last T step the stable log-sigmoid is evaluated once per
    V-tile and the three lane-dense partials are emitted:
        a   = counts * log(sigmoid(s))     (per lane)
        c   = counts                       (per lane)
        sig = sigmoid(s)                   (per lane)
    The wrapper finishes with  out = sum(a) - sum(c) * log(sum(sig)).
    """
    j = pl.program_id(1)

    @pl.when(j == 0)
    def _():
        c_ref[...] = jnp.zeros_like(c_ref)

    # Stream the x tile: one sublane-reduce + lane-wise accumulate per element.
    x = x_ref[...].astype(jnp.float32)                       # (TT, TV)
    c_ref[...] += jnp.sum(x, axis=0, keepdims=True).reshape(c_ref.shape)

    @pl.when(j == pl.num_programs(1) - 1)
    def _():
        s = s_ref[...].astype(jnp.float32)                   # (1, TV)
        # Stable log(sigmoid(s)) = min(s, 0) - log(1 + exp(-|s|)):
        # never overflows exp, never produces -inf for finite s.
        logsig = jnp.minimum(s, 0.0) - jnp.log(1.0 + jnp.exp(-jnp.abs(s)))
        sig = jnp.exp(logsig)                                # == sigmoid(s)
        counts = c_ref[...]                                  # (1, 1, TV)
        a_ref[...] = counts * logsig.reshape(a_ref.shape)
        sig_ref[...] = sig.reshape(sig_ref.shape)


def unigram_forward(x: jax.Array, s: jax.Array, *,
                    tt: int = 512, tv: int = 2048,
                    x_compute_dtype=jnp.bfloat16) -> jax.Array:
    """Forward pass of the Unigram module.  x: (V, T), s: (V, 1) -> (1, 1)."""
    V, T = x.shape
    assert s.shape == (V, 1)

    # Lane-dense layout: put V on the lane (last) dimension (wrapper-side).
    # x holds token counts (small integers for one-hot inputs), so bf16 is
    # exact; accumulation stays in f32 inside the kernel.
    xt = x.astype(x_compute_dtype).T                         # (T, V)
    srow = s.astype(jnp.float32).reshape(1, V)               # (1, V)

    # Tile sizes: lane dim multiple of 128, sublane dim multiple of 8.
    # Default (512, 2048) bf16 tile = 2 MiB per buffer -> fits comfortably in
    # default scoped VMEM on v5e/v6e/v7x with double buffering.
    tv_eff = min(tv, _round_up(V, 128))
    tt_eff = min(tt, _round_up(T, 8))
    V_pad = _round_up(V, tv_eff)
    T_pad = _round_up(T, tt_eff)
    nV = V_pad // tv_eff
    nT = T_pad // tt_eff

    xt = jnp.pad(xt, ((0, T_pad - T), (0, V_pad - V)))
    # Pad s with a very negative (finite) value: sigmoid -> 0 exactly and the
    # padded lanes have zero counts, so they contribute nothing to any sum.
    srow = jnp.pad(srow, ((0, 0), (0, V_pad - V)), constant_values=-1e30)

    part_shape = jax.ShapeDtypeStruct((nV, 1, tv_eff), jnp.float32)
    part_spec = pl.BlockSpec((1, 1, tv_eff), lambda i, j: (i, 0, 0))

    x_bytes = T_pad * V_pad * jnp.dtype(x_compute_dtype).itemsize
    cost = pl.CostEstimate(
        flops=2 * T_pad * V_pad,
        transcendentals=3 * V_pad,
        bytes_accessed=x_bytes + 4 * V_pad + 3 * 4 * nV * tv_eff,
    )

    a_part, c_part, sig_part = pl.pallas_call(
        unigram_kernel,
        out_shape=(part_shape, part_shape, part_shape),
        grid_spec=pltpu.PrefetchScalarGridSpec(
            num_scalar_prefetch=0,
            grid=(nV, nT),
            in_specs=[
                pl.BlockSpec((tt_eff, tv_eff), lambda i, j: (j, i)),   # x tile
                pl.BlockSpec((1, tv_eff), lambda i, j: (0, i)),        # s tile
            ],
            out_specs=(part_spec, part_spec, part_spec),
        ),
        compiler_params=pltpu.CompilerParams(
            dimension_semantics=("parallel", "arbitrary")),
        cost_estimate=cost,
    )(xt, srow)

    # Tiny scalar epilogue (done in the wrapper so the V grid axis can be
    # 'parallel' and split across TensorCores on v7x):
    #   out = sum_v counts_v*logsig_v - (sum_v counts_v)*log(sum_v sig_v)
    A = jnp.sum(a_part)
    C = jnp.sum(c_part)
    S = jnp.sum(sig_part)
    return (A - C * jnp.log(S)).reshape(1, 1)


def init_unigram_param(V: int) -> jax.Array:
    """Deterministic init matching Unigram.__init__: s0 = logit(1/V)."""
    p0 = np.ones((V, 1), dtype=np.float64) / V
    s0 = np.log(p0) - np.log(1.0 - p0)                        # logit
    return jnp.asarray(s0, dtype=jnp.float32)


if __name__ == "__main__":
    V, T = 32, 8                                              # small vocab, few tokens

    # Parameter (deterministic, from module __init__ semantics).
    s = init_unigram_param(V)

    # Example input: (V, T) float32 — one-hot columns like the original use-case.
    key = jax.random.PRNGKey(0)
    token_ids = jax.random.randint(key, (T,), 0, V)
    x = jax.nn.one_hot(token_ids, V, dtype=jnp.float32).T     # (V, T)

    fwd = jax.jit(unigram_forward)
    out = fwd(x, s)
    jax.block_until_ready(out)

    # Plain-JAX reference check of forward semantics.
    sig = jax.nn.sigmoid(s)
    p = sig / jnp.sum(sig)
    ref = jnp.sum(x, axis=1, keepdims=True).T @ jnp.log(p)    # (1, 1)
    assert out.shape == (1, 1)
    np.testing.assert_allclose(np.asarray(out), np.asarray(ref), rtol=1e-5, atol=1e-5)

    print("KERNEL_OK")
</pallas_src>

<mosaic_0001>
module attributes {stable_mosaic.version = 11 : i64} {
  func.func @unigram_kernel(%arg0: i32, %arg1: i32, %arg2: memref<8x128xbf16, #tpu.memory_space<vmem>>, %arg3: memref<1x128xf32, #tpu.memory_space<vmem>>, %arg4: memref<1x1x128xf32, #tpu.memory_space<vmem>>, %arg5: memref<1x1x128xf32, #tpu.memory_space<vmem>>, %arg6: memref<1x1x128xf32, #tpu.memory_space<vmem>>) attributes {dimension_semantics = [#tpu.dimension_semantics<parallel>, #tpu.dimension_semantics<arbitrary>], iteration_bounds = array<i64: 1, 1>, scalar_prefetch = 0 : i64, scratch_operands = 0 : i64, tpu.core_type = #tpu.core_type<tc>, window_params = [{transform_indices = @transform_0, window_bounds = array<i64: 8, 128>}, {transform_indices = @transform_1, window_bounds = array<i64: 1, 128>}, {transform_indices = @transform_2, window_bounds = array<i64: 1, 1, 128>}, {transform_indices = @transform_3, window_bounds = array<i64: 1, 1, 128>}, {transform_indices = @transform_4, window_bounds = array<i64: 1, 1, 128>}]} {
    %c0_i32 = arith.constant 0 : i32
    %0 = arith.cmpi eq, %arg1, %c0_i32 : i32
    %1 = arith.extui %0 : i1 to i32
    %c0_i32_0 = arith.constant 0 : i32
    %2 = arith.cmpi ne, %1, %c0_i32_0 : i32
    scf.if %2 {
      %cst_10 = arith.constant 0.000000e+00 : f32
      %14 = vector.broadcast %cst_10 : f32 to vector<1x1x128xf32>
      %c0_11 = arith.constant 0 : index
      %c0_12 = arith.constant 0 : index
      %c0_13 = arith.constant 0 : index
      %15 = vector.load %arg5[%c0_11, %c0_12, %c0_13] : memref<1x1x128xf32, #tpu.memory_space<vmem>>, vector<1x1x128xf32>
      tpu.vector_store %arg5[%c0_11, %c0_12, %c0_13], %14 {strides = array<i32>} : memref<1x1x128xf32, #tpu.memory_space<vmem>>, vector<1x1x128xf32>,
    } else {
    }
    %c0 = arith.constant 0 : index
    %c0_1 = arith.constant 0 : index
    %3 = vector.load %arg2[%c0, %c0_1] : memref<8x128xbf16, #tpu.memory_space<vmem>>, vector<8x128xbf16>
    %4 = arith.extf %3 : vector<8x128xbf16> to vector<8x128xf32>
    %c0_2 = arith.constant 0 : index
    %c0_3 = arith.constant 0 : index
    %c0_4 = arith.constant 0 : index
    %5 = vector.load %arg5[%c0_2, %c0_3, %c0_4] : memref<1x1x128xf32, #tpu.memory_space<vmem>>, vector<1x1x128xf32>
    %cst = arith.constant dense<0.000000e+00> : vector<128xf32>
    %6 = vector.multi_reduction <add>, %4, %cst [0] : vector<8x128xf32> to vector<128xf32>
    %7 = vector.shape_cast %6 : vector<128xf32> to vector<1x128xf32>
    %8 = vector.shape_cast %7 : vector<1x128xf32> to vector<1x1x128xf32>
    %9 = arith.addf %5, %8 : vector<1x1x128xf32>
    %c0_5 = arith.constant 0 : index
    %c0_6 = arith.constant 0 : index
    %c0_7 = arith.constant 0 : index
    %10 = vector.load %arg5[%c0_5, %c0_6, %c0_7] : memref<1x1x128xf32, #tpu.memory_space<vmem>>, vector<1x1x128xf32>
    tpu.vector_store %arg5[%c0_5, %c0_6, %c0_7], %9 {strides = array<i32>} : memref<1x1x128xf32, #tpu.memory_space<vmem>>, vector<1x1x128xf32>,
    %c0_i32_8 = arith.constant 0 : i32
    %11 = arith.cmpi eq, %arg1, %c0_i32_8 : i32
    %12 = arith.extui %11 : i1 to i32
    %c0_i32_9 = arith.constant 0 : i32
    %13 = arith.cmpi ne, %12, %c0_i32_9 : i32
    scf.if %13 {
      %c0_10 = arith.constant 0 : index
      %c0_11 = arith.constant 0 : index
      %14 = vector.load %arg3[%c0_10, %c0_11] : memref<1x128xf32, #tpu.memory_space<vmem>>, vector<1x128xf32>
      %cst_12 = arith.constant 0.000000e+00 : f32
      %15 = vector.broadcast %cst_12 : f32 to vector<1x128xf32>
      %16 = arith.minimumf %14, %15 : vector<1x128xf32>
      %17 = math.absf %14 : vector<1x128xf32>
      %cst_13 = arith.constant 0.000000e+00 : f32
      %18 = vector.broadcast %cst_13 : f32 to vector<1x128xf32>
      %19 = arith.subf %18, %17 : vector<1x128xf32>
      %20 = math.exp %19 : vector<1x128xf32>
      %cst_14 = arith.constant 1.000000e+00 : f32
      %21 = vector.broadcast %cst_14 : f32 to vector<1x128xf32>
      %22 = arith.addf %21, %20 : vector<1x128xf32>
      %23 = math.log %22 : vector<1x128xf32>
      %24 = arith.subf %16, %23 : vector<1x128xf32>
      %25 = math.exp %24 : vector<1x128xf32>
      %c0_15 = arith.constant 0 : index
      %c0_16 = arith.constant 0 : index
      %c0_17 = arith.constant 0 : index
      %26 = vector.load %arg5[%c0_15, %c0_16, %c0_17] : memref<1x1x128xf32, #tpu.memory_space<vmem>>, vector<1x1x128xf32>
      %27 = vector.shape_cast %24 : vector<1x128xf32> to vector<1x1x128xf32>
      %28 = arith.mulf %26, %27 : vector<1x1x128xf32>
      %c0_18 = arith.constant 0 : index
      %c0_19 = arith.constant 0 : index
      %c0_20 = arith.constant 0 : index
      %29 = vector.load %arg4[%c0_18, %c0_19, %c0_20] : memref<1x1x128xf32, #tpu.memory_space<vmem>>, vector<1x1x128xf32>
      tpu.vector_store %arg4[%c0_18, %c0_19, %c0_20], %28 {strides = array<i32>} : memref<1x1x128xf32, #tpu.memory_space<vmem>>, vector<1x1x128xf32>,
      %30 = vector.shape_cast %25 : vector<1x128xf32> to vector<1x1x128xf32>
      %c0_21 = arith.constant 0 : index
      %c0_22 = arith.constant 0 : index
      %c0_23 = arith.constant 0 : index
      %31 = vector.load %arg6[%c0_21, %c0_22, %c0_23] : memref<1x1x128xf32, #tpu.memory_space<vmem>>, vector<1x1x128xf32>
      tpu.vector_store %arg6[%c0_21, %c0_22, %c0_23], %30 {strides = array<i32>} : memref<1x1x128xf32, #tpu.memory_space<vmem>>, vector<1x1x128xf32>,
    } else {
    }
    return
  }
  func.func @transform_0(%arg0: i32, %arg1: i32) -> (i32, i32) {
    %c0_i32 = arith.constant 0 : i32
    return %arg1, %arg0 : i32, i32
  }
  func.func @transform_1(%arg0: i32, %arg1: i32) -> (i32, i32) {
    %c0_i32 = arith.constant 0 : i32
    %c0_i32_0 = arith.constant 0 : i32
    return %c0_i32, %arg0 : i32, i32
  }
  func.func @transform_2(%arg0: i32, %arg1: i32) -> (i32, i32, i32) {
    %c0_i32 = arith.constant 0 : i32
    %c0_i32_0 = arith.constant 0 : i32
    %c0_i32_1 = arith.constant 0 : i32
    return %arg0, %c0_i32, %c0_i32_0 : i32, i32, i32
  }
  func.func @transform_3(%arg0: i32, %arg1: i32) -> (i32, i32, i32) {
    %c0_i32 = arith.constant 0 : i32
    %c0_i32_0 = arith.constant 0 : i32
    %c0_i32_1 = arith.constant 0 : i32
    return %arg0, %c0_i32, %c0_i32_0 : i32, i32, i32
  }
  func.func @transform_4(%arg0: i32, %arg1: i32) -> (i32, i32, i32) {
    %c0_i32 = arith.constant 0 : i32
    %c0_i32_0 = arith.constant 0 : i32
    %c0_i32_1 = arith.constant 0 : i32
    return %arg0, %c0_i32, %c0_i32_0 : i32, i32, i32
  }
}

</mosaic_0001>

<bundles_post_ra>
// kernel: unigram_forward.1
= control target key start
LH: loop header
LB: loop body
LE: loop exit
PB: predicated region body
PF: predicated region fallthrough
CT: control target
= control target key end

     0   :  { %v68_v0 = vmov 0.0   ;;  %s118_s3 = inlined_call_operand.vmem [shape: f32[1,1,128], index: 3, kind: output, shape index: {1}]   ;;  %s119_s0 = inlined_call_operand.vmem [shape: bf16[8,128], index: 0, kind: input, shape index: {}]   ;;  %s120_s1 = inlined_call_operand.vmem [shape: f32[1,128], index: 1, kind: input, shape index: {}]   ;;  %s121_s2 = inlined_call_operand.vmem [shape: f32[1,1,128], index: 2, kind: output, shape index: {0}]   ;;  %s122_s4 = inlined_call_operand.vmem [shape: f32[1,1,128], index: 4, kind: output, shape index: {2}]  }
   0x1   :  { %18 = vst [vmem:[%s118_s3] sm:$0x1] %v68_v0  ;;  %v19_v1 = vld [vmem:[%s119_s0] sm:$0xf] }
   0x2   :  { %v33_v2 = vld [vmem:[%s120_s1] sm:$0x1]  ;;  %v20_v3 = vunpack.c.l.bf16 %v19_v1 }
   0x3   :  { %v35_v4 = vand.u32 2147483647, %v33_v2  ;;  %v34_v17 = vmin.f32 %v33_v2, 0.0 }
   0x4   :  { %v22_v5 = vrot.slane %v20_v3, 4 }
   0x5   :  { %v36_v6 = vsub.f32 0.0, %v35_v4 }
   0x6   :  { %v23_v7 = vadd.f32 %v22_v5, %v20_v3 }
   0x7   :  { %v37_v8 = vmul.f32 1.442695, %v36_v6 }
   0x8   :  { %v24_v9 = vrot.slane %v23_v7, 2  ;;  %v21_v12 = vld [vmem:[%s118_s3] sm:$0x1] }
   0x9   :  { %62 = vpow2.f32 %v37_v8 }
   0xa   :  { %v25_v10 = vadd.f32 %v24_v9, %v23_v7 }
   0xc   :  { %v26_v11 = vrot.slane %v25_v10, 1 }
   0xe   :  { %v27_v13 = vadd.f32 %v26_v11, %v25_v10 }
  0x10   :  { %v28_v14 = vadd.f32 %v27_v13, %v21_v12 }
  0x12   :  { %29 = vst [vmem:[%s118_s3] sm:$0x1] %v28_v14 }
  0x16   :  { %v63_v15 = vpop.eup %62 }
  0x17   :  { %v39_v16 = vadd.f32 1.0, %v63_v15 }
  0x19   :  { %64 = vlog2.f32 %v39_v16  ;;  %v45_v20 = vld [vmem:[%s118_s3] sm:$0x1] }
  0x26   :  { %v65_v18 = vpop.eup %64 }
  0x27   :  { %v41_v19 = vmul.f32 0.6931472, %v65_v18 }
  0x29   :  { %v42_v21 = vsub.f32 %v34_v17, %v41_v19 }
  0x2b   :  { %v43_v22 = vmul.f32 1.442695, %v42_v21  ;;  %v46_v23 = vmul.f32 %v45_v20, %v42_v21 }
  0x2d   :  { %66 = vpow2.f32 %v43_v22  ;;  %47 = vst [vmem:[%s121_s2] sm:$0x1] %v46_v23 }
  0x3a   :  { %v67_v24 = vpop.eup %66 }
  0x3b   :  { %48 = vst [vmem:[%s122_s4] sm:$0x1] %v67_v24 }

</bundles_post_ra>
